<compile_context>
chip_gen: v6e
topology: v6e:2x2x1
jax: 0.10.0
libtpu: 0.0.40
codegen_flags: <defaults>
</compile_context>

<pallas_src>
import functools

import jax
import jax.numpy as jnp
from jax import lax
from jax.experimental import pallas as pl
from jax.experimental.pallas import tpu as pltpu

EPS = 1e-5


def _pick_tile(total, preferred, multiple):
    """Largest t <= preferred with t % multiple == 0 and total % t == 0 (fallback: total)."""
    t = min(total, max(preferred, multiple))
    t -= t % multiple
    while t >= multiple:
        if total % t == 0:
            return t
        t -= multiple
    return total


def _fold_bn(sum_p, sq_p, count, g, be):
    """Reduce per-tile partial stats and fold BatchNorm into per-channel scale/shift."""
    c = sum_p.shape[-1]
    s = jnp.sum(sum_p.reshape(-1, c), axis=0, keepdims=True)
    q = jnp.sum(sq_p.reshape(-1, c), axis=0, keepdims=True)
    mu = s / count
    var = jnp.maximum(q / count - mu * mu, 0.0)
    scale = g * lax.rsqrt(var + EPS)
    shift = be - mu * scale
    return scale, shift


# ---------------- Stage 1: relu(x @ W1 + b1) -> per-tile batch stats only ----------------

def _stats1_kernel(x_ref, w1_ref, b1_ref, sum_ref, sq_ref):
    a1 = jnp.maximum(
        jnp.dot(x_ref[...], w1_ref[...], preferred_element_type=jnp.float32)
        + b1_ref[...], 0.0)
    sum_ref[0] = jnp.sum(a1, axis=0, keepdims=True)
    sq_ref[0] = jnp.sum(a1 * a1, axis=0, keepdims=True)


def _stats1(x, w1, b1, tm):
    rows, cin = x.shape
    cout = w1.shape[1]
    nm = rows // tm
    return pl.pallas_call(
        _stats1_kernel,
        grid=(nm,),
        in_specs=[
            pl.BlockSpec((tm, cin), lambda i: (i, 0)),
            pl.BlockSpec((cin, cout), lambda i: (0, 0)),     # weights stay resident
            pl.BlockSpec((1, cout), lambda i: (0, 0)),
        ],
        out_specs=[
            pl.BlockSpec((1, 1, cout), lambda i: (i, 0, 0)),
            pl.BlockSpec((1, 1, cout), lambda i: (i, 0, 0)),
        ],
        out_shape=[jax.ShapeDtypeStruct((nm, 1, cout), jnp.float32)] * 2,
        compiler_params=pltpu.CompilerParams(dimension_semantics=("parallel",)),
    )(x, w1, b1)


# ---- Stage 2: recompute L1 -> fold BN1 -> relu(. @ W2 + b2) -> per-tile stats only -------

def _stats2_kernel(x_ref, w1_ref, b1_ref, sc1_ref, sh1_ref, w2_ref, b2_ref,
                   sum_ref, sq_ref, *, compute_dtype):
    a1 = jnp.maximum(
        jnp.dot(x_ref[...], w1_ref[...], preferred_element_type=jnp.float32)
        + b1_ref[...], 0.0)
    h1 = (a1 * sc1_ref[...] + sh1_ref[...]).astype(compute_dtype)
    a2 = jnp.maximum(
        jnp.dot(h1, w2_ref[...], preferred_element_type=jnp.float32)
        + b2_ref[...], 0.0)
    sum_ref[0] = jnp.sum(a2, axis=0, keepdims=True)
    sq_ref[0] = jnp.sum(a2 * a2, axis=0, keepdims=True)


def _stats2(x, w1, b1, sc1, sh1, w2, b2, tm, compute_dtype):
    rows, cin = x.shape
    c1 = w1.shape[1]
    c2 = w2.shape[1]
    nm = rows // tm
    kern = functools.partial(_stats2_kernel, compute_dtype=compute_dtype)
    return pl.pallas_call(
        kern,
        grid=(nm,),
        in_specs=[
            pl.BlockSpec((tm, cin), lambda i: (i, 0)),
            pl.BlockSpec((cin, c1), lambda i: (0, 0)),
            pl.BlockSpec((1, c1), lambda i: (0, 0)),
            pl.BlockSpec((1, c1), lambda i: (0, 0)),
            pl.BlockSpec((1, c1), lambda i: (0, 0)),
            pl.BlockSpec((c1, c2), lambda i: (0, 0)),
            pl.BlockSpec((1, c2), lambda i: (0, 0)),
        ],
        out_specs=[
            pl.BlockSpec((1, 1, c2), lambda i: (i, 0, 0)),
            pl.BlockSpec((1, 1, c2), lambda i: (i, 0, 0)),
        ],
        out_shape=[jax.ShapeDtypeStruct((nm, 1, c2), jnp.float32)] * 2,
        compiler_params=pltpu.CompilerParams(dimension_semantics=("parallel",)),
    )(x, w1, b1, sc1, sh1, w2, b2)


# -- Stage 3: recompute L1+L2, fold BN1/BN2, L3, per-cloud max/min + batch stats of L3 -----

def _pool_kernel(x_ref, w1_ref, b1_ref, sc1_ref, sh1_ref,
                 w2_ref, b2_ref, sc2_ref, sh2_ref, w3_ref, b3_ref,
                 maxv_ref, minv_ref, sum_ref, sq_ref, *, compute_dtype):
    ni = pl.program_id(1)
    a1 = jnp.maximum(
        jnp.dot(x_ref[...], w1_ref[...], preferred_element_type=jnp.float32)
        + b1_ref[...], 0.0)
    h1 = (a1 * sc1_ref[...] + sh1_ref[...]).astype(compute_dtype)
    a2 = jnp.maximum(
        jnp.dot(h1, w2_ref[...], preferred_element_type=jnp.float32)
        + b2_ref[...], 0.0)
    h2 = (a2 * sc2_ref[...] + sh2_ref[...]).astype(compute_dtype)
    a3 = jnp.maximum(
        jnp.dot(h2, w3_ref[...], preferred_element_type=jnp.float32)
        + b3_ref[...], 0.0)                                   # (tp, 1024) f32, pre-BN3
    tmax = jnp.max(a3, axis=0, keepdims=True)
    tmin = jnp.min(a3, axis=0, keepdims=True)
    tsum = jnp.sum(a3, axis=0, keepdims=True)
    tsq = jnp.sum(a3 * a3, axis=0, keepdims=True)

    @pl.when(ni == 0)
    def _():
        maxv_ref[0] = tmax
        minv_ref[0] = tmin
        sum_ref[0] = tsum
        sq_ref[0] = tsq

    @pl.when(ni != 0)
    def _():
        maxv_ref[0] = jnp.maximum(maxv_ref[0], tmax)
        minv_ref[0] = jnp.minimum(minv_ref[0], tmin)
        sum_ref[0] = sum_ref[0] + tsum
        sq_ref[0] = sq_ref[0] + tsq


def _pool_stats(x, w1, b1, sc1, sh1, w2, b2, sc2, sh2, w3, b3, B, N, tp, compute_dtype):
    c1 = w1.shape[1]
    c2 = w2.shape[1]
    c3 = w3.shape[1]
    npt = N // tp
    kern = functools.partial(_pool_kernel, compute_dtype=compute_dtype)
    const = lambda bi, ni: (0, 0)
    return pl.pallas_call(
        kern,
        grid=(B, npt),
        in_specs=[
            pl.BlockSpec((tp, 64), lambda bi, ni: (bi * npt + ni, 0)),
            pl.BlockSpec((64, c1), const),
            pl.BlockSpec((1, c1), const),
            pl.BlockSpec((1, c1), const),
            pl.BlockSpec((1, c1), const),
            pl.BlockSpec((c1, c2), const),
            pl.BlockSpec((1, c2), const),
            pl.BlockSpec((1, c2), const),
            pl.BlockSpec((1, c2), const),
            pl.BlockSpec((c2, c3), const),
            pl.BlockSpec((1, c3), const),
        ],
        out_specs=[pl.BlockSpec((1, 1, c3), lambda bi, ni: (bi, 0, 0))] * 4,
        out_shape=[jax.ShapeDtypeStruct((B, 1, c3), jnp.float32)] * 4,
        compiler_params=pltpu.CompilerParams(
            dimension_semantics=("parallel", "arbitrary")),
    )(x, w1, b1, sc1, sh1, w2, b2, sc2, sh2, w3, b3)


# ---------------- Stage 4: small f32 MLP head -> transform matrix (B, 4096) ---------------

def _nl_head(h, w, b, g, be):
    y = jnp.maximum(jnp.dot(h, w, preferred_element_type=jnp.float32) + b, 0.0)
    mu = jnp.mean(y, axis=0, keepdims=True)
    var = jnp.mean((y - mu) ** 2, axis=0, keepdims=True)
    return (y - mu) * (g * lax.rsqrt(var + EPS)) + be


def _head_kernel(maxv_ref, minv_ref, scale3_ref, shift3_ref,
                 w4, b4, g4, be4, w5, b5, g5, be5, w6, b6, m_ref):
    s3 = scale3_ref[...]
    # maxpool of the (affine) BN3 output from per-cloud max/min of the pre-BN activation;
    # correct for either sign of gamma3.
    hp = jnp.maximum(maxv_ref[...] * s3, minv_ref[...] * s3) + shift3_ref[...]   # (B, 1024)
    h = _nl_head(hp, w4[...], b4[...], g4[...], be4[...])                        # (B, 512)
    h = _nl_head(h, w5[...], b5[...], g5[...], be5[...])                         # (B, 256)
    m_ref[...] = jnp.dot(h, w6[...], preferred_element_type=jnp.float32) + b6[...]


def _head(maxv, minv, scale3, shift3, head_params):
    B = maxv.shape[0]
    n_in = 4 + len(head_params)
    return pl.pallas_call(
        _head_kernel,
        in_specs=[pl.BlockSpec(memory_space=pltpu.MemorySpace.VMEM)] * n_in,
        out_specs=pl.BlockSpec(memory_space=pltpu.MemorySpace.VMEM),
        out_shape=jax.ShapeDtypeStruct((B, 4096), jnp.float32),
    )(maxv, minv, scale3, shift3, *head_params)


# ---------------- Stage 5: per-cloud transform, pair-packed lane-dense output --------------

def _transform_kernel(x2_ref, wblk_ref, out_ref):
    out_ref[...] = jnp.dot(x2_ref[...], wblk_ref[0],
                           preferred_element_type=jnp.float32)


def _apply_transform(x2, wblk, B, N, te):
    rows2 = x2.shape[0]
    npt = N // te
    th = te // 2
    return pl.pallas_call(
        _transform_kernel,
        grid=(B, npt),
        in_specs=[
            pl.BlockSpec((th, 128), lambda bi, ni: (bi * npt + ni, 0)),
            pl.BlockSpec((1, 128, 128), lambda bi, ni: (bi, 0, 0)),
        ],
        out_specs=pl.BlockSpec((th, 128), lambda bi, ni: (bi * npt + ni, 0)),
        out_shape=jax.ShapeDtypeStruct((rows2, 128), jnp.float32),
        compiler_params=pltpu.CompilerParams(
            dimension_semantics=("parallel", "parallel")),
    )(x2, wblk)


# ------------------------------------- Full forward ---------------------------------------

def feature_tnet_pallas(x, params, B, N, *, compute_dtype=jnp.bfloat16,
                        row_tile=8192, point_tile=512, transform_tile=4096):
    """x: (B*N, 64) float32.  params: flat list (see init_params).  Returns (B*N, 64) f32.

    The same tile defaults are appropriate on v5e / v6e / v7x: every stage's working set is
    a small fraction of the default scoped VMEM, so no vmem_limit override is needed.
    compute_dtype=jnp.float32 gives the exact f32 path; bf16 is the fast default.
    """
    assert x.shape == (B * N, 64)
    assert N % 16 == 0, "num_points must be a multiple of 16 (pair-packed output layout)"
    rows = B * N
    (w1, b1, g1, be1, w2, b2, g2, be2, w3, b3, g3, be3,
     w4, b4, g4, be4, w5, b5, g5, be5, w6, b6) = params

    cdt = compute_dtype
    tm = _pick_tile(rows, row_tile, 8)       # row tile for the stats passes
    tp = _pick_tile(N, point_tile, 8)        # per-cloud point tile (layer 3 + pooling)
    te = _pick_tile(N, transform_tile, 16)   # per-cloud point tile (final transform)

    # Cast x and the trunk weights to the compute dtype once (halves x's HBM reads in
    # bf16 mode; a no-op in the exact-f32 configuration).
    x_c = x.astype(cdt)
    w1c, w2c, w3c = (w.astype(cdt) for w in (w1, w2, w3))

    # --- trunk: three stats/pooling passes, no intermediate activation hits HBM ---
    s1, q1 = _stats1(x_c, w1c, b1, tm)
    scale1, shift1 = _fold_bn(s1, q1, rows, g1, be1)

    s2, q2 = _stats2(x_c, w1c, b1, scale1, shift1, w2c, b2, tm, cdt)
    scale2, shift2 = _fold_bn(s2, q2, rows, g2, be2)

    maxv, minv, s3, q3 = _pool_stats(x_c, w1c, b1, scale1, shift1,
                                     w2c, b2, scale2, shift2, w3c, b3,
                                     B, N, tp, cdt)
    scale3, shift3 = _fold_bn(s3, q3, rows, g3, be3)

    # --- tiny f32 MLP head ---
    m = _head(maxv[:, 0, :], minv[:, 0, :], scale3, shift3,
              [w4, b4, g4, be4, w5, b5, g5, be5, w6, b6])            # (B, 4096)

    # --- final transform: out = x @ M^T per cloud, written as a lane-dense slab ---
    # Block-diagonal [[M^T, 0], [0, M^T]] lets the kernel contract the pair-packed
    # (rows/2, 128) x against a (128, 128) weight and store full 128-lane rows.
    mt = jnp.transpose(m.reshape(B, 64, 64), (0, 2, 1))              # M^T per cloud
    wblk = jnp.zeros((B, 128, 128), jnp.float32)
    wblk = wblk.at[:, :64, :64].set(mt).at[:, 64:, 64:].set(mt)
    x2 = x_c.reshape(rows // 2, 128)                                 # pair-packed view
    out2 = _apply_transform(x2, wblk.astype(cdt), B, N, te)          # (rows/2, 128)
    return out2.reshape(rows, 64)


# ---------------- deterministic synthetic parameters & pure-JAX reference -----------------

def init_params(key):
    """Deterministic synthetic init. Linear weights stored as (in, out)."""
    dims = [(64, 64), (64, 128), (128, 1024), (1024, 512), (512, 256)]
    params = []
    for (cin, cout) in dims:
        key, kw, kb, kg, kbe = jax.random.split(key, 5)
        w = 0.05 * jax.random.normal(kw, (cin, cout), jnp.float32)
        b = 0.01 * jax.random.normal(kb, (1, cout), jnp.float32)
        g = 1.0 + 0.05 * jax.random.normal(kg, (1, cout), jnp.float32)
        be = 0.01 * jax.random.normal(kbe, (1, cout), jnp.float32)
        params += [w, b, g, be]
    key, kw, kb = jax.random.split(key, 3)
    w6 = 0.02 * jax.random.normal(kw, (256, 4096), jnp.float32)
    b6 = 0.01 * jax.random.normal(kb, (1, 4096), jnp.float32)
    params += [w6, b6]
    return params


def feature_tnet_ref(x, params, B, N, compute_dtype=jnp.float32):
    """Pure-JAX reference mirroring the PyTorch forward (train-mode BatchNorm).
    compute_dtype sets the operand precision of the heavy matmuls (to match the kernel's
    mixed-precision mode); the head stays f32 like the kernel."""
    (w1, b1, g1, be1, w2, b2, g2, be2, w3, b3, g3, be3,
     w4, b4, g4, be4, w5, b5, g5, be5, w6, b6) = params
    cdt = compute_dtype
    prec = lax.Precision.HIGHEST

    def nl(h, w, b, g, be, dt):
        y = jnp.dot(h.astype(dt), w.astype(dt),
                    preferred_element_type=jnp.float32, precision=prec) + b
        y = jnp.maximum(y, 0.0)
        mu = jnp.mean(y, axis=0, keepdims=True)
        var = jnp.mean((y - mu) ** 2, axis=0, keepdims=True)
        return (y - mu) / jnp.sqrt(var + EPS) * g + be

    h = nl(x, w1, b1, g1, be1, cdt)
    h = nl(h, w2, b2, g2, be2, cdt)
    h = nl(h, w3, b3, g3, be3, cdt)
    hp = jnp.max(h.reshape(B, N, 1024), axis=1)
    h = nl(hp, w4, b4, g4, be4, jnp.float32)
    h = nl(h, w5, b5, g5, be5, jnp.float32)
    m = (jnp.dot(h, w6, preferred_element_type=jnp.float32, precision=prec)
         + b6).reshape(B, 64, 64)
    out = jnp.einsum("bij,bkj->bik",
                     x.reshape(B, N, 64).astype(cdt), m.astype(cdt),
                     preferred_element_type=jnp.float32, precision=prec)
    return out.reshape(B * N, 64)


if __name__ == "__main__":
    B, N = 4, 64                      # 4 point clouds x 64 points = 256 rows (small test)
    key = jax.random.PRNGKey(0)
    key, kx = jax.random.split(key)
    x = jax.random.normal(kx, (B * N, 64), jnp.float32)
    params = init_params(key)

    # Small tiles so the test exercises multi-tile grids, the cross-tile BN stats path,
    # and the per-cloud accumulation in the pooling stage.
    kw = dict(row_tile=64, point_tile=32, transform_tile=32)

    # 1) exact-precision configuration vs the faithful f32 reference (tight check).
    out_f32 = jax.block_until_ready(
        feature_tnet_pallas(x, params, B, N, compute_dtype=jnp.float32, **kw))
    ref_f32 = feature_tnet_ref(x, params, B, N, jnp.float32)
    assert out_f32.shape == (B * N, 64)
    assert jnp.allclose(out_f32, ref_f32, rtol=1e-3, atol=1e-3), "f32 mismatch vs reference"

    # 2) default mixed-precision (bf16 MXU operands) path vs a precision-matched reference.
    #    The 4-cloud batch makes the head's small-batch BatchNorm statistics extremely
    #    precision sensitive, so use a normalized-error bound rather than element-wise
    #    tolerances (this still catches any structural / layout bug, which would be O(1)).
    out_bf16 = jax.block_until_ready(feature_tnet_pallas(x, params, B, N, **kw))
    ref_bf16 = feature_tnet_ref(x, params, B, N, jnp.bfloat16)
    assert out_bf16.shape == (B * N, 64)
    assert bool(jnp.all(jnp.isfinite(out_bf16)))
    rel = float(jnp.linalg.norm(out_bf16 - ref_bf16) / jnp.linalg.norm(ref_bf16))
    assert rel < 0.05, f"bf16 path diverges from precision-matched reference: rel={rel:.4f}"

    print("KERNEL_OK")
</pallas_src>

<mosaic_0001>
module attributes {stable_mosaic.version = 11 : i64} {
  func.func @_stats1_kernel(%arg0: i32, %arg1: memref<64x64xf32, #tpu.memory_space<vmem>>, %arg2: memref<64x64xf32, #tpu.memory_space<vmem>>, %arg3: memref<1x64xf32, #tpu.memory_space<vmem>>, %arg4: memref<1x1x64xf32, #tpu.memory_space<vmem>>, %arg5: memref<1x1x64xf32, #tpu.memory_space<vmem>>) attributes {dimension_semantics = [#tpu.dimension_semantics<parallel>], iteration_bounds = array<i64: 4>, scalar_prefetch = 0 : i64, scratch_operands = 0 : i64, tpu.core_type = #tpu.core_type<tc>, window_params = [{transform_indices = @transform_0, window_bounds = array<i64: 64, 64>}, {pipeline_mode = #tpu.pipeline_mode<synchronous>, transform_indices = @transform_1, window_bounds = array<i64: 64, 64>}, {pipeline_mode = #tpu.pipeline_mode<synchronous>, transform_indices = @transform_2, window_bounds = array<i64: 1, 64>}, {transform_indices = @transform_3, window_bounds = array<i64: 1, 1, 64>}, {transform_indices = @transform_4, window_bounds = array<i64: 1, 1, 64>}]} {
    %c0 = arith.constant 0 : index
    %c0_0 = arith.constant 0 : index
    %0 = vector.load %arg1[%c0, %c0_0] : memref<64x64xf32, #tpu.memory_space<vmem>>, vector<64x64xf32>
    %c0_1 = arith.constant 0 : index
    %c0_2 = arith.constant 0 : index
    %1 = vector.load %arg2[%c0_1, %c0_2] : memref<64x64xf32, #tpu.memory_space<vmem>>, vector<64x64xf32>
    %cst = arith.constant dense<0.000000e+00> : vector<64x64xf32>
    %2 = tpu.matmul %0, %1, %cst {dimension_numbers = #tpu.dot_dimension_numbers<[1], [0], [0], [1], [0, 0, 1, 1], [], []>} : vector<64x64xf32>, vector<64x64xf32>, vector<64x64xf32> -> vector<64x64xf32>
    %c0_3 = arith.constant 0 : index
    %c0_4 = arith.constant 0 : index
    %3 = vector.load %arg3[%c0_3, %c0_4] : memref<1x64xf32, #tpu.memory_space<vmem>>, vector<1x64xf32>
    %4 = vector.broadcast %3 : vector<1x64xf32> to vector<64x64xf32>
    %5 = arith.addf %2, %4 : vector<64x64xf32>
    %cst_5 = arith.constant 0.000000e+00 : f32
    %6 = vector.broadcast %cst_5 : f32 to vector<64x64xf32>
    %7 = arith.maximumf %5, %6 : vector<64x64xf32>
    %cst_6 = arith.constant dense<0.000000e+00> : vector<64xf32>
    %8 = vector.multi_reduction <add>, %7, %cst_6 [0] : vector<64x64xf32> to vector<64xf32>
    %9 = vector.shape_cast %8 : vector<64xf32> to vector<1x64xf32>
    %c0_7 = arith.constant 0 : index
    %c0_8 = arith.constant 0 : index
    %c0_9 = arith.constant 0 : index
    %10 = vector.load %arg4[%c0_7, %c0_8, %c0_9] : memref<1x1x64xf32, #tpu.memory_space<vmem>>, vector<1x1x64xf32>
    %11 = vector.shape_cast %10 : vector<1x1x64xf32> to vector<1x64xf32>
    %12 = vector.shape_cast %9 : vector<1x64xf32> to vector<1x1x64xf32>
    tpu.vector_store %arg4[%c0_7, %c0_8, %c0_9], %12 {strides = array<i32>} : memref<1x1x64xf32, #tpu.memory_space<vmem>>, vector<1x1x64xf32>,
    %13 = arith.mulf %7, %7 : vector<64x64xf32>
    %cst_10 = arith.constant dense<0.000000e+00> : vector<64xf32>
    %14 = vector.multi_reduction <add>, %13, %cst_10 [0] : vector<64x64xf32> to vector<64xf32>
    %15 = vector.shape_cast %14 : vector<64xf32> to vector<1x64xf32>
    %c0_11 = arith.constant 0 : index
    %c0_12 = arith.constant 0 : index
    %c0_13 = arith.constant 0 : index
    %16 = vector.load %arg5[%c0_11, %c0_12, %c0_13] : memref<1x1x64xf32, #tpu.memory_space<vmem>>, vector<1x1x64xf32>
    %17 = vector.shape_cast %16 : vector<1x1x64xf32> to vector<1x64xf32>
    %18 = vector.shape_cast %15 : vector<1x64xf32> to vector<1x1x64xf32>
    tpu.vector_store %arg5[%c0_11, %c0_12, %c0_13], %18 {strides = array<i32>} : memref<1x1x64xf32, #tpu.memory_space<vmem>>, vector<1x1x64xf32>,
    return
  }
  func.func @transform_0(%arg0: i32) -> (i32, i32) {
    %c0_i32 = arith.constant 0 : i32
    %c0_i32_0 = arith.constant 0 : i32
    return %arg0, %c0_i32 : i32, i32
  }
  func.func @transform_1(%arg0: i32) -> (i32, i32) {
    %c0_i32 = arith.constant 0 : i32
    %c0_i32_0 = arith.constant 0 : i32
    %c0_i32_1 = arith.constant 0 : i32
    return %c0_i32, %c0_i32_0 : i32, i32
  }
  func.func @transform_2(%arg0: i32) -> (i32, i32) {
    %c0_i32 = arith.constant 0 : i32
    %c0_i32_0 = arith.constant 0 : i32
    %c0_i32_1 = arith.constant 0 : i32
    return %c0_i32, %c0_i32_0 : i32, i32
  }
  func.func @transform_3(%arg0: i32) -> (i32, i32, i32) {
    %c0_i32 = arith.constant 0 : i32
    %c0_i32_0 = arith.constant 0 : i32
    %c0_i32_1 = arith.constant 0 : i32
    return %arg0, %c0_i32, %c0_i32_0 : i32, i32, i32
  }
  func.func @transform_4(%arg0: i32) -> (i32, i32, i32) {
    %c0_i32 = arith.constant 0 : i32
    %c0_i32_0 = arith.constant 0 : i32
    %c0_i32_1 = arith.constant 0 : i32
    return %arg0, %c0_i32, %c0_i32_0 : i32, i32, i32
  }
}

</mosaic_0001>

<bundles_post_ra>
// kernel: tpu_custom_call.1
= control target key start
LH: loop header
LB: loop body
LE: loop exit
PB: predicated region body
PF: predicated region fallthrough
CT: control target
= control target key end

     0   :  { %10 = vsyncpa [#allocation3], 0  ;;  %s974_s0 = inlined_call_operand.vmem [shape: f32[256,64], index: 0, kind: input, shape index: {}]   ;;  %s975_s1 = inlined_call_operand.vmem [shape: f32[64,64], index: 1, kind: input, shape index: {}]   ;;  %s976_s2 = inlined_call_operand.vmem [shape: f32[1,64], index: 2, kind: input, shape index: {}]   ;;  %s977_s3 = inlined_call_operand.hbm [shape: f32[4,1,64], index: 3, kind: output, shape index: {0}]   ;;  %s978_s4 = inlined_call_operand.hbm [shape: f32[4,1,64], index: 4, kind: output, shape index: {1}]  }
   0x1   :  { %12 = vsyncpa [#allocation3 + $0x1], 0 }
   0x2   :  { %13 = vsyncpa [#allocation5], 0 }
   0x3   :  { %15 = vsyncpa [#allocation5 + $0x1], 0  ;;  %s776_s15 = smov 0   ;;  %s778_s16 = smov 0  }
   0x4   :  { %s780_s17 = smov 0   ;;  %s782_s18 = smov 0  }
   0x5 LB: > { %s797_s19 = sadd.s32 4294967295, %s747_s18   ;;  %s534_s20 = sadd.s32 4294967294, %s747_s18   ;;  %s747_s18 = sphi %s782_s18, %s984_s18   ;;  %s743_s17 = sphi %s780_s17, %s983_s17   ;;  %s739_s16 = sphi %s778_s16, %s982_s16   ;;  %s735_s15 = sphi %s776_s15, %s981_s15  }
   0x6   : > { %s801_s21 = sadd.s32 1, %s747_s18   ;;  %s96_s22 = sadd.s32 1, %s743_s17 }
   0x7   : > { %s93_s23 = ssub.s32 %s747_s18, %s801_s21  ;;  %p106_p0 = scmp.ne.s32.totalorder %s743_s17, %s739_s16 }
   0x8   : > { %p94_p1 = scmp.eq.s32.totalorder %s93_s23, 0  ;;  %p107_p2 = scmp.eq.s32.totalorder %s797_s19, 3 }
   0x9   : > { %p112_p3 = scmp.ne.s32.totalorder %s739_s16, %s735_s15  ;;  %p113_p4 = scmp.eq.s32.totalorder %s534_s20, 3 }
   0xa   : > { %s812_s24 = scalar_select %p94_p1, %s743_s17, %s96_s22  }
   0xb   : > { %p814_p5 = por %p107_p2, %p106_p0  ;;  %p818_p6 = por %p113_p4, %p112_p3 }
   0xc   : > { %p537_p7 = scmp.ge.s32.totalorder %s747_s18, 1  ;;  %p172_p8 = scmp.lt.s32.totalorder %s747_s18, 5 }
   0xe   : > { %p173_p9 = pnand %p537_p7, %p172_p8 }
   0xf   : > { %s538_s5 = sshll.u32 (!%p173_p9), %s797_s19, 3  ;;  %s890_s7 = sand.u32 (!%p173_p9), 1, %s739_s16  }
  0x10   : > { %176 = sbr.rel (%p173_p9) target bundleno = 301 (0x12d), region = 32  ;;  %p202_p10 = scmp.lt.s32.totalorder (!%p173_p9), %s538_s5, 31 }
  0x11   : > { %s549_s8 = sshll.u32 (!%p173_p9), %s797_s19, 4  ;;  %s194_s9 = scalar_lea.vmem (!%p173_p9), [#allocation2], %s890_s7 }
  0x12   : > { %s200_s11 = scalar_lea.vmem (!%p173_p9), [#allocation4], %s890_s7  ;;  %s908_s23 = scalar_lea.hbm (!%p173_p9), %s978_s4, %s549_s8 }
  0x13   : > { %s451_s12 = sshll.u32 (!%p173_p9), %s200_s11, 4  ;;  %s422_s27 = scalar_lea.sflag (!%p173_p9), [#allocation3], %s890_s7  ;;  %s910_s12 = int_to_ptr.vmem [resolvable:$true] %s451_s12 }
  0x14   : > { %s749_s29 = smov (!%p173_p9), [#allocation2]  }
  0x15   : > { %v222_v0 = vld [vmem:[%s975_s1 + $0x38] sm:$0xff]  ;;  %v221_v1 = vld [vmem:[%s975_s1 + $0x30] sm:$0xff]  ;;  %v220_v2 = vld [vmem:[%s975_s1 + $0x28] sm:$0xff]  ;;  %s986_s5 = smov (!%p202_p10, %s538_s5), 31  ;;  %vm230_vm0 = vcmask 523264   ;;  %vm389_vm1 = vcmask 516096  }
  0x16   : > { %569 = vmatprep.subr.mxu0 %v222_v0  ;;  %597 = vmatprep.subr.mxu1 %v222_v0  ;;  %v219_v3 = vld [vmem:[%s975_s1 + $0x20] sm:$0xff]  ;;  %s539_s10 = sshll.u32 %s986_s5, 3  ;;  %v218_v4 = vld [vmem:[%s975_s1 + $0x18] sm:$0xff]  ;;  %v217_v5 = vld [vmem:[%s975_s1 + $0x10] sm:$0xff]  ;;  %s661_s30 = sshll.u32 %s749_s29, 4  ;;  %s662_s30 = int_to_ptr.vmem [resolvable:$false] %s661_s30 }
  0x17   : > { %570 = vmatpush3.msra.mxu0 %v222_v0  ;;  %605 = vmatpush3.msra.mxu1 %v222_v0  ;;  %s843_s20 = scalar_lea.vmem %s974_s0, %s539_s10  ;;  %v216_v7 = vld [vmem:[%s975_s1 + $0x8] sm:$0xff]  ;;  %v215_v8 = vld [vmem:[%s975_s1] sm:$0xff]  ;;  %s438_s10 = sshll.u32 %s194_s9, 4  ;;  %s902_s10 = int_to_ptr.vmem [resolvable:$true] %s438_s10 }
  0x18   : > { %571 = vmatprep.subr.mxu0 %v221_v1  ;;  %598 = vmatprep.subr.mxu1 %v221_v1  ;;  %v207_v6 = vld [vmem:[%s843_s20] sm:$0xff]  ;;  %v208_v9 = vld [vmem:[%s843_s20 + $0x8] sm:$0xff]  ;;  %v209_v10 = vld [vmem:[%s843_s20 + $0x10] sm:$0xff]  ;;  %s657_s28 = scalar_lea.vmem %s902_s10, 16  ;;  %s663_s5 = scalar_lea.vmem %s662_s30, 32 }
  0x19   : > { %572 = vmatpush3.msra.mxu0 %v221_v1  ;;  %606 = vmatpush3.msra.mxu1 %v221_v1  ;;  %v211_v11 = vld [vmem:[%s843_s20 + $0x20] sm:$0xff]  ;;  %v212_v12 = vld [vmem:[%s843_s20 + $0x28] sm:$0xff]  ;;  %v213_v13 = vld [vmem:[%s843_s20 + $0x30] sm:$0xff]  ;;  %p658_p11 = scmp.ne.s32.totalorder %s902_s10, %s657_s28  ;;  %p664_p0 = scmp.lt.s32.totalorder %s902_s10, %s662_s30 }
  0x1a   : > { %573 = vmatprep.subr.mxu0 %v220_v2  ;;  %599 = vmatprep.subr.mxu1 %v220_v2  ;;  %v210_v14 = vld [vmem:[%s843_s20 + $0x18] sm:$0xff]  ;;  %v540_v16 = vld [vmem:[%s976_s2] ss:$0 sm:$0xff]  ;;  %p665_p1 = scmp.lt.s32.totalorder %s663_s5, %s657_s28 }
  0x1b   : > { %574 = vmatpush3.msra.mxu0 %v220_v2  ;;  %607 = vmatpush3.msra.mxu1 %v220_v2  ;;  %v214_v15 = vld [vmem:[%s843_s20 + $0x38] sm:$0xff]  ;;  %s900_s20 = scalar_lea.hbm %s977_s3, %s549_s8  ;;  %p659_p12 = pnand %p658_p11, %p814_p5 }
  0x1c   : > { %575 = vmatprep.subr.mxu0 %v219_v3  ;;  %600 = vmatprep.subr.mxu1 %v219_v3  ;;  %p666_p2 = por %p665_p1, %p664_p0 }
  0x1d   : > { %576 = vmatpush3.msra.mxu0 %v219_v3  ;;  %608 = vmatpush3.msra.mxu1 %v219_v3  ;;  %p660_p13 = pneg %p659_p12 }
  0x1e   : > { %577 = vmatprep.subr.mxu0 %v218_v4  ;;  %601 = vmatprep.subr.mxu1 %v218_v4 }
  0x1f   : > { %578 = vmatpush3.msra.mxu0 %v218_v4  ;;  %609 = vmatpush3.msra.mxu1 %v218_v4  ;;  %p667_p3 = pnand %p666_p2, %p660_p13 }
  0x20   : > { %579 = vmatprep.subr.mxu0 %v217_v5  ;;  %585 = vmatprep.mubr.msk.f32.mxu0 %vm230_vm0, %v207_v6 }
  0x21   : > { %580 = vmatpush3.msra.mxu0 %v217_v5  ;;  %602 = vmatprep.subr.mxu1 %v217_v5 }
  0x22   : > { %581 = vmatprep.subr.mxu0 %v216_v7  ;;  %610 = vmatpush3.msra.mxu1 %v217_v5 }
  0x23   : > { %582 = vmatpush3.msra.mxu0 %v216_v7  ;;  %603 = vmatprep.subr.mxu1 %v216_v7 }
  0x24   : > { %583 = vmatprep.subr.mxu0 %v215_v8  ;;  %611 = vmatpush3.msra.mxu1 %v216_v7 }
  0x25   : > { %584 = vmatpush3.msra.mxu0 %v215_v8  ;;  %604 = vmatprep.subr.mxu1 %v215_v8 }
  0x26   : > { %586 = vmatmul.mubr.msk.f32.vlgmr.msra.gmra.mxu0 %vm230_vm0, %v208_v9  ;;  %612 = vmatpush3.msra.mxu1 %v215_v8 }
  0x27   : > { %588 = vmatprep.mubr.msk.f32.mxu0 %vm230_vm0, %v209_v10  ;;  %591 = vmatprep.mubr.msk.f32.mxu1 %vm230_vm0, %v211_v11 }
  0x28   : > { %592 = vmatmul.mubr.msk.f32.vlgmr.msra.gmra.mxu1 %vm230_vm0, %v212_v12 }
  0x29   : > { %594 = vmatprep.mubr.msk.f32.mxu1 %vm230_vm0, %v213_v13 }
  0x2a   : > { %589 = vmatmul.mubr.msk.f32.gmra.mxu0 %vm230_vm0, %v210_v14 }
  0x2c   : > { %595 = vmatmul.mubr.msk.f32.gmra.mxu1 %vm230_vm0, %v214_v15 }
  0xe6   : > { %v587_v17 = vpop.f32.mrf.mxu0 }
  0xe7   : > { %v327_v18 = vadd.f32 %v587_v17, %v540_v16 }
  0xe8   : > { %v321_v19 = vpop.f32.mrf.mxu0  ;;  %v593_v20 = vpop.f32.mrf.mxu1 }
  0xe9   : > { %v361_v21 = vmax.f32 %v327_v18, 0.0  ;;  %v322_v22 = vadd.f32 %v540_v16, %v321_v19  ;;  %v347_v32 = vadd.f32 %v593_v20, %v540_v16 }
  0xea   : > { %v590_v23 = vpop.f32.mrf.mxu0  ;;  %v341_v24 = vpop.f32.mrf.mxu1 }
  0xeb   : > { %v360_v25 = vmax.f32 %v322_v22, 0.0  ;;  %v337_v26 = vadd.f32 %v590_v23, %v540_v16  ;;  %v342_v28 = vadd.f32 %v540_v16, %v341_v24  ;;  %v392_v30 = vmul.f32 %v361_v21, %v361_v21 }
  0xec   : > { %v331_v27 = vpop.f32.mrf.mxu0  ;;  %v596_v29 = vpop.f32.mrf.mxu1  ;;  %v369_v37 = vsel %vm230_vm0, %v361_v21, 0.0  ;;  %v365_v43 = vmax.f32 %v347_v32, 0.0 }
  0xed   : > { %v391_v31 = vmul.f32 %v360_v25, %v360_v25  ;;  %v368_v33 = vsel %vm230_vm0, %v360_v25, 0.0  ;;  %v363_v34 = vmax.f32 %v337_v26, 0.0  ;;  %v332_v35 = vadd.f32 %v540_v16, %v331_v27 }
  0xee   : > { %v351_v36 = vpop.f32.mrf.mxu1  ;;  %v364_v40 = vmax.f32 %v342_v28, 0.0  ;;  %v400_v41 = vsel %vm230_vm0, %v392_v30, 0.0  ;;  %v370_v42 = vadd.f32 %v369_v37, %v368_v33  ;;  %v357_v48 = vadd.f32 %v596_v29, %v540_v16 }
  0xef   : > { %v399_v38 = vsel %vm230_vm0, %v391_v31, 0.0  ;;  %v362_v39 = vmax.f32 %v332_v35, 0.0  ;;  %v352_v44 = vadd.f32 %v540_v16, %v351_v36  ;;  %v394_v45 = vmul.f32 %v363_v34, %v363_v34 }
  0xf0   : > { %v401_v49 = vadd.f32 %v400_v41, %v399_v38  ;;  %v373_v51 = vsel %vm230_vm0, %v363_v34, 0.0  ;;  %v395_v53 = vmul.f32 %v364_v40, %v364_v40  ;;  %v396_v58 = vmul.f32 %v365_v43, %v365_v43 }
  0xf1   : > { %v371_v46 = vsel %vm230_vm0, %v362_v39, 0.0  ;;  %v393_v47 = vmul.f32 %v362_v39, %v362_v39  ;;  %v366_v54 = vmax.f32 %v352_v44, 0.0  ;;  %v404_v57 = vsel %vm230_vm0, %v394_v45, 0.0 }
  0xf2   : > { %v372_v50 = vadd.f32 %v371_v46, %v370_v42  ;;  %v375_v59 = vsel %vm230_vm0, %v364_v40, 0.0  ;;  %v367_v60 = vmax.f32 %v357_v48, 0.0  ;;  %v377_v63 = vsel %vm230_vm0, %v365_v43, 0.0 }
  0xf3   : > { %v402_v52 = vsel %vm230_vm0, %v393_v47, 0.0  ;;  %v406_v0 = vsel %vm230_vm0, %v395_v53, 0.0  ;;  %v397_v1 = vmul.f32 %v366_v54, %v366_v54  ;;  %v408_v4 = vsel %vm230_vm0, %v396_v58, 0.0 }
  0xf4   : > { %v403_v55 = vadd.f32 %v402_v52, %v401_v49  ;;  %v374_v56 = vadd.f32 %v373_v51, %v372_v50  ;;  %v398_v5 = vmul.f32 %v367_v60, %v367_v60  ;;  %v379_v6 = vsel %vm230_vm0, %v366_v54, 0.0 }
  0xf5   : > { %v381_v9 = vsel %vm230_vm0, %v367_v60, 0.0  ;;  %v410_v10 = vsel %vm230_vm0, %v397_v1, 0.0 }
  0xf6   : > { %v376_v61 = vadd.f32 %v375_v59, %v374_v56  ;;  %v405_v62 = vadd.f32 %v404_v57, %v403_v55  ;;  %v412_v13 = vsel %vm230_vm0, %v398_v5, 0.0 }
  0xf8   : > { %v407_v2 = vadd.f32 %v406_v0, %v405_v62  ;;  %v378_v3 = vadd.f32 %v377_v63, %v376_v61 }
  0xfa   : > { %v380_v7 = vadd.f32 %v379_v6, %v378_v3  ;;  %v409_v8 = vadd.f32 %v408_v4, %v407_v2 }
  0xfc   : > { %v382_v11 = vadd.f32 %v381_v9, %v380_v7  ;;  %v411_v12 = vadd.f32 %v410_v10, %v409_v8 }
  0xfe   : > { %v383_v14 = vrot.slane %v382_v11, 4  ;;  %v413_v15 = vadd.f32 %v412_v13, %v411_v12 }
 0x100   : > { %v384_v16 = vadd.f32 %v383_v14, %v382_v11  ;;  %v414_v17 = vrot.slane %v413_v15, 4 }
 0x102   : > { %v385_v18 = vrot.slane %v384_v16, 2  ;;  %v415_v19 = vadd.f32 %v414_v17, %v413_v15 }
 0x104   : > { %v386_v20 = vadd.f32 %v385_v18, %v384_v16  ;;  %v416_v21 = vrot.slane %v415_v19, 2 }
 0x106   : > { %v387_v22 = vrot.slane %v386_v20, 1  ;;  %v417_v23 = vadd.f32 %v416_v21, %v415_v19 }
 0x108   : > { %v388_v24 = vadd.f32 %v387_v22, %v386_v20  ;;  %v418_v25 = vrot.slane %v417_v23, 1 }
 0x10a   : > { %390 = vst.msk [vmem:[%s194_s9] sm:$0x1] %vm389_vm1, %v388_v24  ;;  %v419_v26 = vadd.f32 %v418_v25, %v417_v23 }
 0x10b   : > { %670 = shalt.err (!%p667_p3)
}
 0x10c   : > { %s671_s6 = scalar_lea.hbm %s900_s20, 16  ;;  %s675_s13 = scalar_lea.hbm %s977_s3, 64 }
 0x10d   : > { %p672_p4 = scmp.ne.s32.totalorder %s900_s20, %s671_s6  ;;  %p676_p9 = scmp.lt.s32.totalorder %s900_s20, %s977_s3 }
 0x10e   : > { %p677_p10 = scmp.lt.s32.totalorder %s675_s13, %s671_s6 }
 0x10f   : > { %p673_p7 = pnand %p672_p4, %p814_p5 }
 0x110   : > { %p678_p11 = por %p677_p10, %p676_p9 }
 0x111   : > { %p674_p8 = pneg %p673_p7 }
 0x113   : > { %p679_p12 = pnand %p678_p11, %p674_p8 }
 0x115   : > { %682 = shalt.err (!%p679_p12)
}
 0x116   : > { %613 = dma.vmem_to_hbm [thread:$0]  (%p814_p5), %s902_s10, 16, %s900_s20, %s422_s27   ;;  %420 = vst.msk [vmem:[%s200_s11] sm:$0x1] %vm389_vm1, %v419_v26 }
 0x117   : > { %s426_s22 = scalar_lea.sflag [#allocation5], %s890_s7  ;;  %s683_s28 = scalar_lea.vmem %s910_s12, 16 }
 0x118   : > { %p684_p13 = scmp.ne.s32.totalorder %s910_s12, %s683_s28  ;;  %s750_s29 = smov [#allocation4]  }
 0x119   : > { %s687_s30 = sshll.u32 %s750_s29, 4  ;;  %s688_s30 = int_to_ptr.vmem [resolvable:$false] %s687_s30 }
 0x11a   : > { %p685_p0 = pnand %p684_p13, %p814_p5  ;;  %s689_s5 = scalar_lea.vmem %s688_s30, 32 }
 0x11b   : > { %p690_p2 = scmp.lt.s32.totalorder %s910_s12, %s688_s30  ;;  %p691_p3 = scmp.lt.s32.totalorder %s689_s5, %s683_s28 }
 0x11c   : > { %p686_p1 = pneg %p685_p0 }
 0x11d   : > { %p692_p4 = por %p691_p3, %p690_p2 }
 0x11f   : > { %p693_p7 = pnand %p692_p4, %p686_p1 }
 0x121   : > { %696 = shalt.err (!%p693_p7)
}
 0x122   : > { %s697_s10 = scalar_lea.hbm %s908_s23, 16  ;;  %s701_s20 = scalar_lea.hbm %s978_s4, 64 }
 0x123   : > { %p698_p8 = scmp.ne.s32.totalorder %s908_s23, %s697_s10  ;;  %p702_p11 = scmp.lt.s32.totalorder %s908_s23, %s978_s4 }
 0x124   : > { %p703_p12 = scmp.lt.s32.totalorder %s701_s20, %s697_s10 }
 0x125   : > { %p699_p9 = pnand %p698_p8, %p814_p5 }
 0x126   : > { %p704_p13 = por %p703_p12, %p702_p11 }
 0x127   : > { %p700_p10 = pneg %p699_p9 }
 0x129   : > { %p705_p0 = pnand %p704_p13, %p700_p10 }
 0x12b   : > { %708 = shalt.err (!%p705_p0)
}
 0x12c   : > { %614 = dma.vmem_to_hbm [thread:$0]  (%p814_p5), %s910_s12, 16, %s908_s23, %s426_s22  }
 0x12d PF: > { %p624_p1 = scmp.ge.s32.totalorder %s747_s18, 2  ;;  %s463_s8 = sand.u32 1, %s735_s15  }
 0x12e   : > { %s464_s9 = scalar_lea.sflag [#allocation3], %s463_s8 }
 0x12f   : > { %p618_p2 = pnand %p624_p1, %p818_p6 }
 0x131   : > { %p619_p3 = pneg %p618_p2 }
 0x133   : > { %726 = dma.done.wait (%p619_p3), %s464_s9, 16  }
 0x134   : > { %728 = vsyncadd (%p619_p3), %s464_s9, 4294967280  ;;  %s472_s13 = scalar_lea.sflag [#allocation5], %s463_s8 }
 0x135   : > { %730 = dma.done.wait (%p619_p3), %s472_s13, 16  }
 0x136   : > { %732 = vsyncadd (%p619_p3), %s472_s13, 4294967280  ;;  %p18_p5 = scmp.ge.s32.totalorder %s801_s21, 6   ;;  %s981_s15 = smov %s739_s16 }
 0x137   : > { %s982_s16 = smov %s743_s17  ;;  %s983_s17 = smov %s812_s24 }
 0x138   : > { %s984_s18 = smov %s801_s21  ;;  %20 = sbr.rel (!%p18_p5) target bundleno = 5 (0x5), region = 84 }
 0x13d   :  { %476 = vsyncpa [#allocation3], 1 }
 0x13e   :  { %478 = vsyncpa [#allocation3 + $0x1], 1 }
 0x13f   :  { %479 = vsyncpa [#allocation5], 1 }
 0x140   :  { %481 = vsyncpa [#allocation5 + $0x1], 1 }

</bundles_post_ra>
